<compile_context>
chip_gen: v6e
topology: v6e:2x2x1
jax: 0.10.0
libtpu: 0.0.40
codegen_flags: <defaults>
</compile_context>

<pallas_src>
import functools

import jax
import jax.numpy as jnp
from jax.experimental import pallas as pl
from jax.experimental.pallas import tpu as pltpu


def _focal_kernel(x_ref, t_ref, out_ref, acc_ref, *, gamma, alpha, hw,
                  s_tile, n_inner, n_chunks, ragged):
    chunk = pl.program_id(1)      # parallel spatial chunk
    j = pl.program_id(2)          # arbitrary (reduction) spatial step

    @pl.when(j == 0)
    def _():
        acc_ref[...] = jnp.zeros_like(acc_ref)

    num_classes = x_ref.shape[1]
    # Class axis is a leading block dim: each xs[c] is a dense (S, 128) slab.
    xs = [x_ref[0, c].astype(jnp.float32) for c in range(num_classes)]
    t = t_ref[0, 0]                                     # (S, 128) int32 targets

    # Numerically stable log-softmax over the class axis, fully unrolled:
    # C-1 elementwise maxes, C exps, C-1 adds, one log.  No sublane reductions.
    m = xs[0]
    for c in range(1, num_classes):
        m = jnp.maximum(m, xs[c])
    zs = [xc - m for xc in xs]
    es = [jnp.exp(zc) for zc in zs]
    se = es[0]
    for c in range(1, num_classes):
        se = se + es[c]
    lse = jnp.log(se)

    # Target "gather" via per-class selects (no gather/scatter on TPU).
    zt = jnp.where(t == 0, zs[0], 0.0)
    et = jnp.where(t == 0, es[0], 0.0)
    for c in range(1, num_classes):
        hit = t == c
        zt = jnp.where(hit, zs[c], zt)
        et = jnp.where(hit, es[c], et)

    logpt = zt - lse                                    # log p_target
    pt = et / se                                        # p_target, no second exp

    if alpha is not None:
        # alpha[target] built from Python scalar constants (no captured array).
        at = jnp.where(t == 0, alpha[0], 0.0)
        for c in range(1, num_classes):
            at = jnp.where(t == c, alpha[c], at)
        logpt_w = logpt * at
    else:
        logpt_w = logpt

    g = float(gamma)
    if g == 0.0:
        focal = -logpt_w
    else:
        omp = 1.0 - pt
        if g.is_integer() and 1.0 <= g <= 8.0:
            w = omp
            for _ in range(int(g) - 1):                 # plain VPU multiplies
                w = w * omp
        else:
            # TODO(synk): non-integer gamma falls back to float pow (exp/log on EUP).
            w = omp ** g
        focal = -(w * logpt_w)                          # (S, 128)

    if ragged:
        # Only the globally-last tile contains pad / out-of-range columns.
        is_last = jnp.logical_and(chunk == n_chunks - 1, j == n_inner - 1)

        @pl.when(is_last)
        def _():
            s_iota = jax.lax.broadcasted_iota(jnp.int32, focal.shape, 0)
            l_iota = jax.lax.broadcasted_iota(jnp.int32, focal.shape, 1)
            col = ((chunk * n_inner + j) * s_tile + s_iota) * 128 + l_iota
            # Select (not multiply-by-mask): NaN-safe w.r.t. garbage pad data.
            acc_ref[...] += jnp.where(col < hw, focal, 0.0)

        @pl.when(jnp.logical_not(is_last))
        def _():
            acc_ref[...] += focal
    else:
        acc_ref[...] += focal

    @pl.when(j == n_inner - 1)
    def _():
        out_ref[...] = jnp.sum(acc_ref[...]).reshape(1, 1, 1, 1)


def _pick_s_tile(n128, num_classes, logits_dtype):
    """Spatial tile height (in 128-lane rows), sized per-chip from VMEM."""
    try:
        phys = pltpu.get_tpu_info().vmem_capacity_bytes
    except Exception:
        phys = 64 * 1024 * 1024                # conservative (v7x-sized) default
    vmem_limit = int(min((phys * 3) // 4, 96 * 1024 * 1024))
    budget = vmem_limit // 2                   # headroom for Mosaic's own use

    itemsize = jnp.dtype(logits_dtype).itemsize
    # Per 128-lane column: double-buffered inputs (logits + int32 targets),
    # f32 accumulator, and the elementwise f32 temps (x/z/e per class + ~12).
    per_col = 2 * (num_classes * itemsize + 4) + 4 * (3 * num_classes + 13)
    rows = budget // (per_col * 128)
    rows = max(32, (rows // 32) * 32)          # multiple of 32: f32/bf16/int8 safe
    return int(min(rows, n128)), vmem_limit    # clamping to n128 == full extent


def focal_loss(logits_nchw, target_nhw, *, gamma=2.0, alpha=None,
               size_average=True):
    """Focal loss forward pass matching the PyTorch FocalLoss module."""
    N, C, H, W = logits_nchw.shape
    HW = H * W

    # Mirror the PyTorch module's alpha handling; bake it in as constants.
    if alpha is None:
        alpha_t = None
    elif isinstance(alpha, (int, float)):
        alpha_t = (float(alpha), 1.0 - float(alpha))
    else:
        alpha_t = tuple(float(a) for a in alpha)
    if alpha_t is not None and len(alpha_t) != C:
        raise ValueError("alpha must have one entry per class")

    n128 = pl.cdiv(HW, 128)
    hw_p = n128 * 128

    x = logits_nchw.reshape(N, C, HW)                    # free, stays NCHW order
    t = target_nhw.reshape(N, 1, HW).astype(jnp.int32)   # no-op if already int32
    if hw_p != HW:
        # TODO(synk): ragged HW needs a one-off pad copy to reach the lane-dense
        # (n128, 128) layout; pad columns are excluded in the last grid step.
        x = jnp.pad(x, ((0, 0), (0, 0), (0, hw_p - HW)))
        t = jnp.pad(t, ((0, 0), (0, 0), (0, hw_p - HW)))
    x = x.reshape(N, C, n128, 128)                       # class axis leading
    t = t.reshape(N, 1, n128, 128)

    s_tile, vmem_limit = _pick_s_tile(n128, C, x.dtype)
    n_tiles = pl.cdiv(n128, s_tile)

    # Give v7x's second TensorCore work when the batch axis alone can't.
    n_chunks = 2 if (N % 2 == 1 and n_tiles % 2 == 0) else 1
    n_inner = n_tiles // n_chunks

    ragged = (n_tiles * s_tile * 128) != HW

    kernel = functools.partial(
        _focal_kernel, gamma=float(gamma), alpha=alpha_t, hw=HW,
        s_tile=s_tile, n_inner=n_inner, n_chunks=n_chunks, ragged=ragged)

    partials = pl.pallas_call(
        kernel,
        out_shape=jax.ShapeDtypeStruct((N, n_chunks, 1, 1), jnp.float32),
        grid_spec=pltpu.PrefetchScalarGridSpec(
            num_scalar_prefetch=0,
            grid=(N, n_chunks, n_inner),
            in_specs=[
                pl.BlockSpec((1, C, s_tile, 128),
                             lambda n, c, j: (n, 0, c * n_inner + j, 0)),
                pl.BlockSpec((1, 1, s_tile, 128),
                             lambda n, c, j: (n, 0, c * n_inner + j, 0)),
            ],
            out_specs=pl.BlockSpec((1, 1, 1, 1), lambda n, c, j: (n, c, 0, 0)),
            scratch_shapes=[pltpu.VMEM((s_tile, 128), jnp.float32)],
        ),
        compiler_params=pltpu.CompilerParams(
            dimension_semantics=("parallel", "parallel", "arbitrary"),
            vmem_limit_bytes=vmem_limit,
        ),
    )(x, t)

    loss = jnp.sum(partials)
    if size_average:
        loss = loss / float(N * HW)
    return loss


def _reference(logits_nchw, target_nhw, gamma, alpha, size_average):
    N, C, H, W = logits_nchw.shape
    x = jnp.transpose(logits_nchw.reshape(N, C, H * W), (0, 2, 1)).reshape(-1, C)
    t = target_nhw.reshape(-1).astype(jnp.int32)
    logp = jax.nn.log_softmax(x.astype(jnp.float32), axis=-1)
    logpt = jnp.take_along_axis(logp, t[:, None], axis=1)[:, 0]
    pt = jnp.exp(logpt)
    if alpha is not None:
        if isinstance(alpha, (int, float)):
            alpha = [float(alpha), 1.0 - float(alpha)]
        at = jnp.asarray(alpha, jnp.float32)[t]
        logpt = logpt * at
    loss = -1.0 * (1.0 - pt) ** gamma * logpt
    return loss.mean() if size_average else loss.sum()


if __name__ == "__main__":
    key = jax.random.PRNGKey(0)
    k1, k2, k3, k4 = jax.random.split(key, 4)

    # Main case: N=2, C=4, 16x16 spatial, per-class alpha, gamma=2.
    N, C, H, W = 2, 4, 16, 16
    logits = jax.random.normal(k1, (N, C, H, W), dtype=jnp.float32)
    target = jax.random.randint(k2, (N, H, W), 0, C, dtype=jnp.int32)

    gamma = 2.0
    alpha = [0.25, 0.5, 0.75, 1.0]

    out = focal_loss(logits, target, gamma=gamma, alpha=alpha, size_average=True)
    out = jax.block_until_ready(out)
    ref = _reference(logits, target, gamma, alpha, True)
    assert jnp.allclose(out, ref, rtol=1e-5, atol=1e-5), (out, ref)

    # No-alpha / gamma=0 / sum-reduction static branches.
    out2 = focal_loss(logits, target, gamma=0.0, alpha=None, size_average=False)
    out2 = jax.block_until_ready(out2)
    ref2 = _reference(logits, target, 0.0, None, False)
    assert jnp.allclose(out2, ref2, rtol=1e-5, atol=1e-3), (out2, ref2)

    # Ragged spatial extent (HW not a multiple of 128): pad + masked last tile.
    N3, H3, W3 = 1, 10, 10
    logits3 = jax.random.normal(k3, (N3, C, H3, W3), dtype=jnp.float32)
    target3 = jax.random.randint(k4, (N3, H3, W3), 0, C, dtype=jnp.int32)
    out3 = focal_loss(logits3, target3, gamma=2.0, alpha=alpha, size_average=True)
    out3 = jax.block_until_ready(out3)
    ref3 = _reference(logits3, target3, 2.0, alpha, True)
    assert jnp.allclose(out3, ref3, rtol=1e-5, atol=1e-5), (out3, ref3)

    print("KERNEL_OK")
</pallas_src>

<mosaic_0001>
module attributes {stable_mosaic.version = 11 : i64} {
  func.func @_focal_kernel(%arg0: i32, %arg1: i32, %arg2: i32, %arg3: memref<1x4x2x128xf32, #tpu.memory_space<vmem>>, %arg4: memref<1x1x2x128xi32, #tpu.memory_space<vmem>>, %arg5: memref<1x1x1x1xf32, #tpu.memory_space<vmem>>, %arg6: memref<2x128xf32, #tpu.memory_space<vmem>>) attributes {dimension_semantics = [#tpu.dimension_semantics<parallel>, #tpu.dimension_semantics<parallel>, #tpu.dimension_semantics<arbitrary>], iteration_bounds = array<i64: 2, 1, 1>, scalar_prefetch = 0 : i64, scratch_operands = 1 : i64, tpu.core_type = #tpu.core_type<tc>, window_params = [{transform_indices = @transform_0, window_bounds = array<i64: 1, 4, 2, 128>}, {transform_indices = @transform_1, window_bounds = array<i64: 1, 1, 2, 128>}, {transform_indices = @transform_2, window_bounds = array<i64: 1, 1, 1, 1>}]} {
    %c0_i32 = arith.constant 0 : i32
    %0 = arith.cmpi eq, %arg2, %c0_i32 : i32
    %1 = arith.extui %0 : i1 to i32
    %c0_i32_0 = arith.constant 0 : i32
    %2 = arith.cmpi ne, %1, %c0_i32_0 : i32
    scf.if %2 {
      %cst_37 = arith.constant 0.000000e+00 : f32
      %80 = vector.broadcast %cst_37 : f32 to vector<2x128xf32>
      %c0_38 = arith.constant 0 : index
      %c0_39 = arith.constant 0 : index
      %81 = vector.load %arg6[%c0_38, %c0_39] : memref<2x128xf32, #tpu.memory_space<vmem>>, vector<2x128xf32>
      tpu.vector_store %arg6[%c0_38, %c0_39], %80 {strides = array<i32>} : memref<2x128xf32, #tpu.memory_space<vmem>>, vector<2x128xf32>,
    } else {
    }
    %c0 = arith.constant 0 : index
    %c0_1 = arith.constant 0 : index
    %c0_2 = arith.constant 0 : index
    %c0_3 = arith.constant 0 : index
    %3 = vector.load %arg3[%c0, %c0_1, %c0_2, %c0_3] : memref<1x4x2x128xf32, #tpu.memory_space<vmem>>, vector<1x1x2x128xf32>
    %4 = vector.shape_cast %3 : vector<1x1x2x128xf32> to vector<2x128xf32>
    %c0_4 = arith.constant 0 : index
    %c1 = arith.constant 1 : index
    %c0_5 = arith.constant 0 : index
    %c0_6 = arith.constant 0 : index
    %5 = vector.load %arg3[%c0_4, %c1, %c0_5, %c0_6] : memref<1x4x2x128xf32, #tpu.memory_space<vmem>>, vector<1x1x2x128xf32>
    %6 = vector.shape_cast %5 : vector<1x1x2x128xf32> to vector<2x128xf32>
    %c0_7 = arith.constant 0 : index
    %c2 = arith.constant 2 : index
    %c0_8 = arith.constant 0 : index
    %c0_9 = arith.constant 0 : index
    %7 = vector.load %arg3[%c0_7, %c2, %c0_8, %c0_9] : memref<1x4x2x128xf32, #tpu.memory_space<vmem>>, vector<1x1x2x128xf32>
    %8 = vector.shape_cast %7 : vector<1x1x2x128xf32> to vector<2x128xf32>
    %c0_10 = arith.constant 0 : index
    %c3 = arith.constant 3 : index
    %c0_11 = arith.constant 0 : index
    %c0_12 = arith.constant 0 : index
    %9 = vector.load %arg3[%c0_10, %c3, %c0_11, %c0_12] : memref<1x4x2x128xf32, #tpu.memory_space<vmem>>, vector<1x1x2x128xf32>
    %10 = vector.shape_cast %9 : vector<1x1x2x128xf32> to vector<2x128xf32>
    %c0_13 = arith.constant 0 : index
    %c0_14 = arith.constant 0 : index
    %c0_15 = arith.constant 0 : index
    %c0_16 = arith.constant 0 : index
    %11 = vector.load %arg4[%c0_13, %c0_14, %c0_15, %c0_16] : memref<1x1x2x128xi32, #tpu.memory_space<vmem>>, vector<1x1x2x128xi32>
    %12 = vector.shape_cast %11 : vector<1x1x2x128xi32> to vector<2x128xi32>
    %13 = arith.maximumf %4, %6 : vector<2x128xf32>
    %14 = arith.maximumf %13, %8 : vector<2x128xf32>
    %15 = arith.maximumf %14, %10 : vector<2x128xf32>
    %16 = arith.subf %4, %15 : vector<2x128xf32>
    %17 = arith.subf %6, %15 : vector<2x128xf32>
    %18 = arith.subf %8, %15 : vector<2x128xf32>
    %19 = arith.subf %10, %15 : vector<2x128xf32>
    %20 = math.exp %16 : vector<2x128xf32>
    %21 = math.exp %17 : vector<2x128xf32>
    %22 = math.exp %18 : vector<2x128xf32>
    %23 = math.exp %19 : vector<2x128xf32>
    %24 = arith.addf %20, %21 : vector<2x128xf32>
    %25 = arith.addf %24, %22 : vector<2x128xf32>
    %26 = arith.addf %25, %23 : vector<2x128xf32>
    %27 = math.log %26 : vector<2x128xf32>
    %c0_i32_17 = arith.constant 0 : i32
    %28 = vector.broadcast %c0_i32_17 : i32 to vector<2x128xi32>
    %29 = arith.cmpi eq, %12, %28 : vector<2x128xi32>
    %cst = arith.constant 0.000000e+00 : f32
    %30 = vector.broadcast %cst : f32 to vector<2x128xf32>
    %31 = arith.select %29, %16, %30 : vector<2x128xi1>, vector<2x128xf32>
    %c0_i32_18 = arith.constant 0 : i32
    %32 = vector.broadcast %c0_i32_18 : i32 to vector<2x128xi32>
    %33 = arith.cmpi eq, %12, %32 : vector<2x128xi32>
    %cst_19 = arith.constant 0.000000e+00 : f32
    %34 = vector.broadcast %cst_19 : f32 to vector<2x128xf32>
    %35 = arith.select %33, %20, %34 : vector<2x128xi1>, vector<2x128xf32>
    %c1_i32 = arith.constant 1 : i32
    %36 = vector.broadcast %c1_i32 : i32 to vector<2x128xi32>
    %37 = arith.cmpi eq, %12, %36 : vector<2x128xi32>
    %38 = arith.select %37, %17, %31 : vector<2x128xi1>, vector<2x128xf32>
    %39 = arith.select %37, %21, %35 : vector<2x128xi1>, vector<2x128xf32>
    %c2_i32 = arith.constant 2 : i32
    %40 = vector.broadcast %c2_i32 : i32 to vector<2x128xi32>
    %41 = arith.cmpi eq, %12, %40 : vector<2x128xi32>
    %42 = arith.select %41, %18, %38 : vector<2x128xi1>, vector<2x128xf32>
    %43 = arith.select %41, %22, %39 : vector<2x128xi1>, vector<2x128xf32>
    %c3_i32 = arith.constant 3 : i32
    %44 = vector.broadcast %c3_i32 : i32 to vector<2x128xi32>
    %45 = arith.cmpi eq, %12, %44 : vector<2x128xi32>
    %46 = arith.select %45, %19, %42 : vector<2x128xi1>, vector<2x128xf32>
    %47 = arith.select %45, %23, %43 : vector<2x128xi1>, vector<2x128xf32>
    %48 = arith.subf %46, %27 : vector<2x128xf32>
    %49 = arith.divf %47, %26 : vector<2x128xf32>
    %c0_i32_20 = arith.constant 0 : i32
    %50 = vector.broadcast %c0_i32_20 : i32 to vector<2x128xi32>
    %51 = arith.cmpi eq, %12, %50 : vector<2x128xi32>
    %cst_21 = arith.constant 2.500000e-01 : f32
    %cst_22 = arith.constant 0.000000e+00 : f32
    %52 = vector.broadcast %cst_21 : f32 to vector<2x128xf32>
    %53 = vector.broadcast %cst_22 : f32 to vector<2x128xf32>
    %54 = arith.select %51, %52, %53 : vector<2x128xi1>, vector<2x128xf32>
    %c1_i32_23 = arith.constant 1 : i32
    %55 = vector.broadcast %c1_i32_23 : i32 to vector<2x128xi32>
    %56 = arith.cmpi eq, %12, %55 : vector<2x128xi32>
    %cst_24 = arith.constant 5.000000e-01 : f32
    %57 = vector.broadcast %cst_24 : f32 to vector<2x128xf32>
    %58 = arith.select %56, %57, %54 : vector<2x128xi1>, vector<2x128xf32>
    %c2_i32_25 = arith.constant 2 : i32
    %59 = vector.broadcast %c2_i32_25 : i32 to vector<2x128xi32>
    %60 = arith.cmpi eq, %12, %59 : vector<2x128xi32>
    %cst_26 = arith.constant 7.500000e-01 : f32
    %61 = vector.broadcast %cst_26 : f32 to vector<2x128xf32>
    %62 = arith.select %60, %61, %58 : vector<2x128xi1>, vector<2x128xf32>
    %c3_i32_27 = arith.constant 3 : i32
    %63 = vector.broadcast %c3_i32_27 : i32 to vector<2x128xi32>
    %64 = arith.cmpi eq, %12, %63 : vector<2x128xi32>
    %cst_28 = arith.constant 1.000000e+00 : f32
    %65 = vector.broadcast %cst_28 : f32 to vector<2x128xf32>
    %66 = arith.select %64, %65, %62 : vector<2x128xi1>, vector<2x128xf32>
    %67 = arith.mulf %48, %66 : vector<2x128xf32>
    %cst_29 = arith.constant 1.000000e+00 : f32
    %68 = vector.broadcast %cst_29 : f32 to vector<2x128xf32>
    %69 = arith.subf %68, %49 : vector<2x128xf32>
    %70 = arith.mulf %69, %69 : vector<2x128xf32>
    %71 = arith.mulf %70, %67 : vector<2x128xf32>
    %cst_30 = arith.constant 0.000000e+00 : f32
    %72 = vector.broadcast %cst_30 : f32 to vector<2x128xf32>
    %73 = arith.subf %72, %71 : vector<2x128xf32>
    %c0_31 = arith.constant 0 : index
    %c0_32 = arith.constant 0 : index
    %74 = vector.load %arg6[%c0_31, %c0_32] : memref<2x128xf32, #tpu.memory_space<vmem>>, vector<2x128xf32>
    %75 = arith.addf %74, %73 : vector<2x128xf32>
    %c0_33 = arith.constant 0 : index
    %c0_34 = arith.constant 0 : index
    %76 = vector.load %arg6[%c0_33, %c0_34] : memref<2x128xf32, #tpu.memory_space<vmem>>, vector<2x128xf32>
    tpu.vector_store %arg6[%c0_33, %c0_34], %75 {strides = array<i32>} : memref<2x128xf32, #tpu.memory_space<vmem>>, vector<2x128xf32>,
    %c0_i32_35 = arith.constant 0 : i32
    %77 = arith.cmpi eq, %arg2, %c0_i32_35 : i32
    %78 = arith.extui %77 : i1 to i32
    %c0_i32_36 = arith.constant 0 : i32
    %79 = arith.cmpi ne, %78, %c0_i32_36 : i32
    scf.if %79 {
      %c0_37 = arith.constant 0 : index
      %c0_38 = arith.constant 0 : index
      %80 = vector.load %arg6[%c0_37, %c0_38] : memref<2x128xf32, #tpu.memory_space<vmem>>, vector<2x128xf32>
      %81 = vector.shape_cast %80 : vector<2x128xf32> to vector<1x2x128xf32>
      %cst_39 = arith.constant dense<0.000000e+00> : vector<1xf32>
      %82 = vector.multi_reduction <add>, %81, %cst_39 [1, 2] : vector<1x2x128xf32> to vector<1xf32>
      %83 = vector.shape_cast %82 : vector<1xf32> to vector<1x1x1xf32>
      %84 = vector.extract %83[0, 0, 0] : f32 from vector<1x1x1xf32>
      %85 = vector.broadcast %84 : f32 to vector<1x1x1x1xf32>
      %c0_40 = arith.constant 0 : index
      %c0_41 = arith.constant 0 : index
      %c0_42 = arith.constant 0 : index
      %c0_43 = arith.constant 0 : index
      %86 = vector.load %arg5[%c0_40, %c0_41, %c0_42, %c0_43] : memref<1x1x1x1xf32, #tpu.memory_space<vmem>>, vector<1x1x1x1xf32>
      tpu.vector_store %arg5[%c0_40, %c0_41, %c0_42, %c0_43], %85 {strides = array<i32>} : memref<1x1x1x1xf32, #tpu.memory_space<vmem>>, vector<1x1x1x1xf32>,
    } else {
    }
    return
  }
  func.func @transform_0(%arg0: i32, %arg1: i32, %arg2: i32) -> (i32, i32, i32, i32) {
    %c1_i32 = arith.constant 1 : i32
    %0 = arith.muli %arg1, %c1_i32 : i32
    %1 = arith.addi %0, %arg2 : i32
    %c0_i32 = arith.constant 0 : i32
    %c0_i32_0 = arith.constant 0 : i32
    %c0_i32_1 = arith.constant 0 : i32
    return %arg0, %c0_i32, %1, %c0_i32_0 : i32, i32, i32, i32
  }
  func.func @transform_1(%arg0: i32, %arg1: i32, %arg2: i32) -> (i32, i32, i32, i32) {
    %c1_i32 = arith.constant 1 : i32
    %0 = arith.muli %arg1, %c1_i32 : i32
    %1 = arith.addi %0, %arg2 : i32
    %c0_i32 = arith.constant 0 : i32
    %c0_i32_0 = arith.constant 0 : i32
    %c0_i32_1 = arith.constant 0 : i32
    return %arg0, %c0_i32, %1, %c0_i32_0 : i32, i32, i32, i32
  }
  func.func @transform_2(%arg0: i32, %arg1: i32, %arg2: i32) -> (i32, i32, i32, i32) {
    %c0_i32 = arith.constant 0 : i32
    %c0_i32_0 = arith.constant 0 : i32
    %c0_i32_1 = arith.constant 0 : i32
    return %arg0, %arg1, %c0_i32, %c0_i32_0 : i32, i32, i32, i32
  }
}

</mosaic_0001>

<bundles_post_ra>
// kernel: tpu_custom_call.1
= control target key start
LH: loop header
LB: loop body
LE: loop exit
PB: predicated region body
PF: predicated region fallthrough
CT: control target
= control target key end

     0   :  { %7 = vsyncpa [#allocation4], 0  ;;  %s775_s0 = inlined_call_operand.hbm [shape: f32[2,4,2,128], index: 0, kind: input, shape index: {}]   ;;  %s776_s1 = inlined_call_operand.hbm [shape: s32[2,1,2,128], index: 1, kind: input, shape index: {}]   ;;  %s777_s2 = inlined_call_operand.vmem [shape: f32[2,1,1,1], index: 2, kind: output, shape index: {}]  }
   0x1   :  { %9 = vsyncpa [#allocation4 + $0x1], 0 }
   0x2   :  { %10 = vsyncpa [#allocation6], 0 }
   0x3   :  { %12 = vsyncpa [#allocation6 + $0x1], 0  ;;  %s651_s9 = smov 0   ;;  %s653_s10 = smov 0  }
   0x4   :  { %s655_s11 = smov 0   ;;  %s657_s12 = smov 0  }
   0x5   :  { %s659_s13 = smov 0   ;;  %s661_s14 = smov 0  }
   0x6 LB: > { %s424_s15 = sadd.s32 4294967295, %s629_s14   ;;  %s37_s16 = sadd.s32 1, %s625_s13  ;;  %s629_s14 = sphi %s661_s14, %s18_s14   ;;  %s625_s13 = sphi %s659_s13, %s786_s13   ;;  %s621_s12 = sphi %s657_s12, %s785_s12   ;;  %s617_s11 = sphi %s655_s11, %s784_s11   ;;  %s613_s10 = sphi %s653_s10, %s783_s10   ;;  %s609_s9 = sphi %s651_s9, %s782_s9  }
   0x7   : > { %p39_p0 = scmp.ge.s32.totalorder %s37_s16, 2  ;;  %s48_s17 = sadd.s32 1, %s617_s11 }
   0x8   : > { %p55_p1 = scmp.ne.s32.totalorder %s617_s11, %s613_s10  ;;  %p56_p2 = scmp.eq.s32.totalorder %s629_s14, 0 }
   0x9   : > { %s788_s16 = smov (%p39_p0, %s37_s16), 0  ;;  %p61_p4 = scmp.ne.s32.totalorder %s613_s10, %s609_s9 }
   0xa   : > { %p687_p3 = por %p56_p2, %p55_p1  ;;  %s43_s19 = ssub.s32 %s625_s13, %s788_s16 }
   0xb   : > { %p62_p5 = scmp.eq.s32.totalorder %s424_s15, 0  ;;  %p46_p6 = scmp.eq.s32.totalorder %s43_s19, 0 }
   0xc   : > { %p455_p8 = scmp.lt.s32.totalorder %s629_s14, 2  ;;  %s703_s22 = sand.u32 1, %s617_s11  }
   0xd   : > { %p694_p7 = por %p62_p5, %p61_p4  ;;  %s441_s23 = sshll.u32 %s625_s13, 7 }
   0xe   : > { %s700_s21 = scalar_select %p46_p6, %s617_s11, %s48_s17  }
   0xf   : > { %s428_s24 = sshll.u32 %s703_s22, 3  ;;  %s155_s27 = scalar_lea.hbm %s775_s0, %s441_s23 }
  0x10   : > { %s147_s28 = scalar_lea.vmem [#allocation3], %s428_s24  ;;  %p712_p9 = pnand %p455_p8, %p687_p3 }
  0x11   : > { %s156_s29 = sshll.u32 %s147_s28, 4  ;;  %s144_s3 = scalar_lea.sflag [#allocation4], %s703_s22  ;;  %s157_s29 = int_to_ptr.vmem [resolvable:$true] %s156_s29 }
  0x12   : > { %p521_p10 = pneg %p712_p9  ;;  %s532_s4 = scalar_lea.vmem %s157_s29, 128 }
  0x13   : > { %p533_p11 = scmp.ne.s32.totalorder %s157_s29, %s532_s4  ;;  %s631_s5 = smov [#allocation3]  }
  0x14   : > { %s537_s6 = sshll.u32 %s631_s5, 4  ;;  %s538_s6 = int_to_ptr.vmem [resolvable:$false] %s537_s6 }
  0x15   : > { %p535_p12 = pnand %p533_p11, %p521_p10  ;;  %s539_s7 = scalar_lea.vmem %s538_s6, 256 }
  0x16   : > { %p540_p0 = scmp.lt.s32.totalorder %s157_s29, %s538_s6  ;;  %p541_p1 = scmp.lt.s32.totalorder %s539_s7, %s532_s4 }
  0x17   : > { %p536_p13 = pneg %p535_p12 }
  0x18   : > { %p542_p2 = por %p541_p1, %p540_p0 }
  0x1a   : > { %p543_p3 = pnand %p542_p2, %p536_p13 }
  0x1c   : > { %546 = shalt.err (!%p543_p3)
}
  0x1d   : > { %s632_s8 = smov 32   ;;  %s633_s9 = smov 2  }
  0x1e   : > { %451 = dma.hbm_to_vmem [thread:$0]  (!%p712_p9), %s155_s27, 128, %s157_s29, %s144_s3, %s632_s8, %s632_s8, %s633_s9  }
  0x1f   : > { %p433_p4 = scmp.ge.s32.totalorder %s629_s14, 1  ;;  %p184_p5 = scmp.lt.s32.totalorder %s629_s14, 3 }
  0x20   : > { %s431_s15 = sshll.u32 %s703_s22, 1  ;;  %s432_s18 = sshll.u32 %s625_s13, 5 }
  0x21   : > { %p727_p6 = pnand %p433_p4, %p184_p5  ;;  %s170_s19 = scalar_lea.vmem [#allocation5], %s431_s15 }
  0x22   : > { %s179_s23 = sshll.u32 %s170_s19, 4  ;;  %s177_s26 = scalar_lea.hbm %s776_s1, %s432_s18  ;;  %s180_s23 = int_to_ptr.vmem [resolvable:$true] %s179_s23 }
  0x23   : > { %s167_s28 = scalar_lea.sflag [#allocation6], %s703_s22  ;;  %s560_s4 = scalar_lea.vmem %s180_s23, 32 }
  0x24   : > { %p561_p8 = scmp.ne.s32.totalorder %s180_s23, %s560_s4  ;;  %s634_s27 = smov [#allocation5]  }
  0x25   : > { %s565_s29 = sshll.u32 %s634_s27, 4  ;;  %s566_s29 = int_to_ptr.vmem [resolvable:$false] %s565_s29 }
  0x26   : > { %p563_p11 = pnand %p561_p8, %p521_p10  ;;  %s567_s3 = scalar_lea.vmem %s566_s29, 64 }
  0x27   : > { %p568_p13 = scmp.lt.s32.totalorder %s180_s23, %s566_s29  ;;  %p569_p0 = scmp.lt.s32.totalorder %s567_s3, %s560_s4 }
  0x28   : > { %p564_p12 = pneg %p563_p11 }
  0x29   : > { %p570_p1 = por %p569_p0, %p568_p13 }
  0x2b   : > { %p571_p2 = pnand %p570_p1, %p564_p12 }
  0x2d   : > { %574 = shalt.err (!%p571_p2)
}
  0x2e   : > { %454 = dma.hbm_to_vmem [thread:$0]  (!%p712_p9), %s177_s26, 32, %s180_s23, %s167_s28  }
  0x2f   : > { %188 = sbr.rel (%p727_p6) target bundleno = 326 (0x146), region = 28  ;;  %s190_s22 = sand.u32 (!%p727_p6), 1, %s613_s10  }
  0x30   : > { %s434_s5 = sshll.u32 (!%p727_p6), %s190_s22, 3  ;;  %s191_s6 = scalar_lea.sflag (!%p727_p6), [#allocation4], %s190_s22 }
  0x31   : > { %s194_s7 = scalar_lea.vmem (!%p727_p6), [#allocation3], %s434_s5 }
  0x34   : > { %600 = dma.done.wait (%p694_p7), %s191_s6, 128  }
  0x35   : > { %602 = vsyncadd (%p694_p7), %s191_s6, 4294967168  ;;  %s435_s8 = sshll.u32 %s190_s22, 1  ;;  %s200_s9 = scalar_lea.sflag [#allocation6], %s190_s22 }
  0x36   : > { %s203_s15 = scalar_lea.vmem [#allocation5], %s435_s8 }
  0x37   : > { %604 = dma.done.wait (%p694_p7), %s200_s9, 32  }
  0x38   : > { %606 = vsyncadd (%p694_p7), %s200_s9, 4294967264  ;;  %v635_v0 = vmov 0.0   ;;  %v243_v1 = vld [vmem:[%s194_s7] sm:$0x3]  ;;  %v436_v2 = vld [vmem:[%s194_s7 + $0x2] sm:$0x3] }
  0x39   : > { %242 = vst [vmem:[#allocation2] sm:$0x3] %v635_v0  ;;  %v437_v3 = vld [vmem:[%s194_s7 + $0x4] sm:$0x3]  ;;  %v251_v4 = vmax.f32 %v243_v1, %v436_v2  ;;  %v438_v5 = vld [vmem:[%s194_s7 + $0x6] sm:$0x3] }
  0x3a   : > { %v250_v22 = vld [vmem:[%s203_s15] sm:$0x3]  ;;  %vm302_vm4 = vcmask 1041408   ;;  %p232_p7 = scmp.lt.s32.totalorder %s621_s12, 1  ;;  %vm314_vm5 = vcmask 0  }
  0x3b   : > { %v252_v6 = vmax.f32 %v251_v4, %v437_v3  ;;  %vm271_vm0 = vcmp.eq.s32.totalorder %v250_v22, 0  ;;  %vm274_vm1 = vcmp.eq.s32.totalorder %v250_v22, 1  ;;  %vm277_vm2 = vcmp.eq.s32.totalorder %v250_v22, 2 }
  0x3c   : > { %v286_v27 = vsel %vm271_vm0, 0.25, %v635_v0  ;;  %vm280_vm3 = vcmp.eq.s32.totalorder %v250_v22, 3  ;;  %s790_s12 = smov (!%p232_p7, %s621_s12), 1 }
  0x3d   : > { %v253_v7 = vmax.f32 %v252_v6, %v438_v5  ;;  %v287_v30 = vsel %vm274_vm1, 0.5, %v286_v27  ;;  %s237_s17 = scalar_lea.vmem %s777_s2, %s790_s12 }
  0x3e   : > { %v288_v33 = vsel %vm277_vm2, 0.75, %v287_v30 }
  0x3f   : > { %v254_v8 = vsub.f32 %v243_v1, %v253_v7  ;;  %v255_v9 = vsub.f32 %v436_v2, %v253_v7  ;;  %v256_v10 = vsub.f32 %v437_v3, %v253_v7  ;;  %v257_v11 = vsub.f32 %v438_v5, %v253_v7 }
  0x40   : > { %v289_v39 = vsel %vm280_vm3, 1.0, %v288_v33  ;;  %v295_v45 = vld [vmem:[#allocation2] sm:$0x3] }
  0x41   : > { %v258_v12 = vmul.f32 1.442695, %v254_v8  ;;  %v260_v13 = vmul.f32 1.442695, %v255_v9  ;;  %v262_v14 = vmul.f32 1.442695, %v256_v10 }
  0x42   : > { %v264_v15 = vmul.f32 1.442695, %v257_v11  ;;  %v272_v25 = vsel %vm271_vm0, %v254_v8, 0.0 }
  0x43   : > { %507 = vpow2.f32 %v258_v12  ;;  %v275_v28 = vsel %vm274_vm1, %v255_v9, %v272_v25 }
  0x44   : > { %509 = vpow2.f32 %v260_v13  ;;  %v278_v31 = vsel %vm277_vm2, %v256_v10, %v275_v28 }
  0x45   : > { %511 = vpow2.f32 %v262_v14  ;;  %v281_v35 = vsel %vm280_vm3, %v257_v11, %v278_v31 }
  0x46   : > { %513 = vpow2.f32 %v264_v15 }
  0x50   : > { %v508_v16 = vpop.eup %507 }
  0x51   : > { %v510_v17 = vpop.eup %509  ;;  %v273_v24 = vsel %vm271_vm0, %v508_v16, 0.0 }
  0x52   : > { %v512_v18 = vpop.eup %511  ;;  %v266_v19 = vadd.f32 %v510_v17, %v508_v16  ;;  %v276_v26 = vsel %vm274_vm1, %v510_v17, %v273_v24 }
  0x53   : > { %v514_v20 = vpop.eup %513  ;;  %v279_v29 = vsel %vm277_vm2, %v512_v18, %v276_v26 }
  0x54   : > { %v267_v21 = vadd.f32 %v512_v18, %v266_v19  ;;  %v282_v32 = vsel %vm280_vm3, %v514_v20, %v279_v29 }
  0x56   : > { %v268_v23 = vadd.f32 %v514_v20, %v267_v21 }
  0x58   : > { %515 = vlog2.f32 %v268_v23 }
  0x59   : > { %517 = vrcp.f32 %v268_v23 }
  0x65   : > { %v516_v34 = vpop.eup %515 }
  0x66   : > { %v518_v36 = vpop.eup %517  ;;  %v270_v37 = vmul.f32 0.6931472, %v516_v34 }
  0x67   : > { %v285_v38 = vmul.f32 %v518_v36, %v282_v32 }
  0x68   : > { %v283_v40 = vsub.f32 %v281_v35, %v270_v37 }
  0x69   : > { %v291_v41 = vsub.f32 1.0, %v285_v38 }
  0x6a   : > { %v290_v42 = vmul.f32 %v289_v39, %v283_v40 }
  0x6b   : > { %v292_v43 = vmul.f32 %v291_v41, %v291_v41 }
  0x6d   : > { %v293_v44 = vmul.f32 %v292_v43, %v290_v42 }
  0x6f   : > { %v294_v46 = vsub.f32 0.0, %v293_v44 }
  0x71   : > { %v296_v47 = vadd.f32 %v295_v45, %v294_v46 }
  0x73   : > { %297 = vst [vmem:[#allocation2] sm:$0x3] %v296_v47 }
  0x7a   : > { %v301_v48 = vld [vmem:[#allocation2] sm:$0x3] }
  0x7b   : > { %v303_v49 = vsel %vm302_vm4, %v301_v48, 0.0 }
  0x7c   : > { %304 = vadd.xlane.f32.xlu0 %v303_v49 }
 0x105   : > { %v305_v50 = vpop.xlane.xlu0 %304 }
 0x106   : > { %v306_v51 = vrot.slane %v305_v50, 4 }
 0x108   : > { %v307_v52 = vadd.f32 %v306_v51, %v305_v50 }
 0x10a   : > { %v308_v53 = vrot.slane %v307_v52, 2 }
 0x10c   : > { %v309_v54 = vadd.f32 %v308_v53, %v307_v52 }
 0x10e   : > { %v310_v55 = vrot.slane %v309_v54, 1 }
 0x110   : > { %v311_v56 = vadd.f32 %v310_v55, %v309_v54 }
 0x112   : > { %442 = vpush %v311_v56 }
 0x143   : > { %s443_s18 = spop %442 }
 0x144   : > { %v313_v57 = vstv %s443_s18 }
 0x145   : > { %315 = vst.msk [vmem:[%s237_s17] sm:$0x1] %vm314_vm5, %v313_v57 }
 0x146 PF: > { %s18_s14 = sadd.s32 1, %s629_s14   ;;  %s782_s9 = smov %s613_s10 }
 0x147   : > { %p15_p9 = scmp.ge.s32.totalorder %s18_s14, 4   ;;  %s783_s10 = smov %s617_s11 }
 0x148   : > { %s784_s11 = smov %s700_s21  ;;  %s785_s12 = smov %s625_s13 }
 0x149   : > { %s786_s13 = smov %s788_s16  ;;  %17 = sbr.rel (!%p15_p9) target bundleno = 6 (0x6), region = 92 }
 0x14e   :  { %339 = vsyncpa [#allocation4], 1 }
 0x14f   :  { %341 = vsyncpa [#allocation4 + $0x1], 1 }
 0x150   :  { %342 = vsyncpa [#allocation6], 1 }
 0x151   :  { %344 = vsyncpa [#allocation6 + $0x1], 1 }

</bundles_post_ra>
